<compile_context>
chip_gen: v7x
topology: tpu7x:2x2x1
jax: 0.10.0
libtpu: 0.0.40
codegen_flags: <defaults>
</compile_context>

<pallas_src>
import functools

import jax
import jax.numpy as jnp
from jax.experimental import pallas as pl
from jax.experimental.pallas import tpu as pltpu


def _round_up(x, m):
    return (x + m - 1) // m * m


# ----------------------------------------------------------------------------
# Pallas kernel: sdf_to_density + transmittance weights + color aggregation
# Layout: samples P on sublanes, rays R on lanes.
# ----------------------------------------------------------------------------
def _sdf_volrender_kernel(deltas_ref, dist_ref, color_ref, lincl_ref, shift_ref,
                          out_ref, *, alpha, inv_beta, eps):
    deltas = deltas_ref[...]                       # (P_pad, R) f32
    dist = dist_ref[...]                           # (P_pad, R) f32

    # sdf_to_density with a single exp (exact rewrite of the two-branch where):
    #   dist > 0 : 0.5*exp(-dist/beta)       = 0.5*e
    #   dist <= 0: 1 - 0.5*exp(dist/beta)    = 1 - 0.5*e     (e = exp(-|dist|/beta))
    e = jnp.exp(-jnp.abs(dist) * inv_beta)
    density = jnp.where(dist > 0.0, 0.5 * e, 1.0 - 0.5 * e) * alpha

    prods = -density * deltas                      # <= 0 everywhere

    # Inclusive cumulative sum over the sample axis via a tiny resident
    # lower-triangular matmul on the MXU:  S[i, r] = sum_{j<=i} prods[j, r]
    log_t_incl = jnp.dot(lincl_ref[...], prods, preferred_element_type=jnp.float32)
    t_incl = jnp.exp(log_t_incl)                   # single exp for transmittance

    # Exclusive transmittance: T_excl[i] = T_incl[i-1], T_excl[0] = 1.
    # Implemented with an exact sub-diagonal shift matmul (MXU slack is huge).
    shifted = jnp.dot(shift_ref[...], t_incl, preferred_element_type=jnp.float32)
    row = jax.lax.broadcasted_iota(jnp.int32, shifted.shape, 0)
    t_excl = jnp.where(row == 0, 1.0, shifted)

    # w_i = T_excl_i * (1 - exp(prods_i)) + eps == T_excl_i - T_incl_i + eps
    w = t_excl - t_incl + eps                      # (P_pad, R)

    color = color_ref[...].astype(jnp.float32)     # (C, P_pad, R)
    out_ref[...] = jnp.sum(color * w[None, :, :], axis=1)     # (C, R) lane-dense


def _choose_ray_tile(n_rays, p_pad, n_ch, max_tile=4096, target_bytes=4 << 20):
    """Pick the lane-axis (ray) tile: ~4 MiB of input bytes per grid step."""
    b128 = _round_up(max(n_rays, 1), 128)
    per_ray_bytes = (2 + n_ch) * p_pad * 4
    tile = max(128, min(max_tile, (target_bytes // per_ray_bytes) // 128 * 128))
    tile = min(tile, b128)
    # v7x has 2 TensorCores; keep grid length >= 2 when the batch allows it so
    # the single "parallel" grid axis can be sharded across both cores.
    if b128 // tile < 2 and b128 >= 256:
        tile = _round_up(b128 // 2, 128)
    return tile


def sdf_volume_render_pallas(deltas, distance, color, alpha, beta,
                             ray_tile=None, eps=1e-10, color_in_bf16=False):
    """deltas/distance: (B, P) f32; color: (B, P, C) -> aggregated (B, C)."""
    B, P = deltas.shape
    C = color.shape[-1]
    f32 = jnp.float32

    p_pad = _round_up(max(P, 1), 8)                # sublane padding only
    if ray_tile is None:
        tile = _choose_ray_tile(B, p_pad, C)
    else:
        tile = max(128, _round_up(int(ray_tile), 128))
    b_pad = _round_up(max(B, 1), tile)

    # Transposed (P on sublanes, rays on lanes) padded inputs.  Padded samples
    # get delta=0 -> w ~= eps and color=0; padded rays are sliced off.
    # TODO(synk): ideally the implicit color/SDF head would emit this layout
    # directly so even this small repack pass disappears.
    deltas_t = jnp.zeros((p_pad, b_pad), f32).at[:P, :B].set(deltas.astype(f32).T)
    dist_t = jnp.zeros((p_pad, b_pad), f32).at[:P, :B].set(distance.astype(f32).T)

    color_dt = jnp.bfloat16 if color_in_bf16 else f32   # bf16: v5e bandwidth win
    color_cpb = jnp.transpose(color.astype(color_dt), (2, 1, 0))        # (C, P, B)
    color_t = jnp.zeros((C, p_pad, b_pad), color_dt).at[:, :P, :B].set(color_cpb)

    # Tiny resident matrices (kept in VMEM across all grid steps):
    #   lincl[i, j] = 1 if j <= i   (inclusive cumsum)
    #   shift[i, j] = 1 if j == i-1 (shift-down-by-one)
    i_idx = jax.lax.broadcasted_iota(jnp.int32, (p_pad, p_pad), 0)
    j_idx = jax.lax.broadcasted_iota(jnp.int32, (p_pad, p_pad), 1)
    lincl = (j_idx <= i_idx).astype(f32)
    shift = (j_idx == i_idx - 1).astype(f32)

    grid = (b_pad // tile,)
    kernel = functools.partial(
        _sdf_volrender_kernel, alpha=float(alpha), inv_beta=float(1.0 / beta),
        eps=float(eps))

    out = pl.pallas_call(
        kernel,
        out_shape=jax.ShapeDtypeStruct((C, b_pad), f32),
        grid=grid,
        in_specs=[
            pl.BlockSpec((p_pad, tile), lambda i: (0, i)),
            pl.BlockSpec((p_pad, tile), lambda i: (0, i)),
            pl.BlockSpec((C, p_pad, tile), lambda i: (0, 0, i)),
            pl.BlockSpec((p_pad, p_pad), lambda i: (0, 0)),   # resident lincl
            pl.BlockSpec((p_pad, p_pad), lambda i: (0, 0)),   # resident shift
        ],
        out_specs=pl.BlockSpec((C, tile), lambda i: (0, i)),
        compiler_params=pltpu.CompilerParams(
            dimension_semantics=("parallel",)),
    )(deltas_t, dist_t, color_t, lincl, shift)
    return out[:, :B].T                                       # (B, C)


# ----------------------------------------------------------------------------
# Glue: ray bundle, stratified sampler, a simple SDF+color implicit function
# ----------------------------------------------------------------------------
class RayBundle:
    def __init__(self, origins, directions, sample_points=None, sample_lengths=None):
        self.origins = origins
        self.directions = directions
        self.sample_points = sample_points
        self.sample_lengths = sample_lengths

    @property
    def shape(self):
        return self.origins.shape

    @property
    def sample_shape(self):
        return self.sample_points.shape

    def _replace(self, **kw):
        d = dict(origins=self.origins, directions=self.directions,
                 sample_points=self.sample_points, sample_lengths=self.sample_lengths)
        d.update(kw)
        return RayBundle(**d)


def make_stratified_sampler(n_pts, near=0.5, far=2.5):
    def sampler(rb):
        z = jnp.linspace(near, far, n_pts, dtype=jnp.float32)            # (P,)
        Bc = rb.origins.shape[0]
        zb = jnp.broadcast_to(z[None, :], (Bc, n_pts))                   # (Bc, P)
        pts = rb.origins[:, None, :] + rb.directions[:, None, :] * zb[..., None]
        lengths = zb[..., None]                                          # (Bc, P, 1)
        return rb._replace(sample_points=pts, sample_lengths=lengths)
    return sampler


class SphereSDF:
    """Analytic sphere SDF + a tiny deterministic color head."""

    def __init__(self, key, feature_dim=3, radius=1.0):
        self.radius = radius
        self.w = jax.random.normal(key, (3, feature_dim), jnp.float32) * 0.5
        self.b = jnp.zeros((feature_dim,), jnp.float32)

    def get_distance_color(self, points):
        distance = jnp.linalg.norm(points, axis=-1, keepdims=True) - self.radius
        color = jax.nn.sigmoid(points @ self.w + self.b)
        return distance, color


# ----------------------------------------------------------------------------
# VolumeSDFRenderer forward (mirrors the PyTorch module)
# ----------------------------------------------------------------------------
class VolumeSDFRenderer:
    def __init__(self, cfg):
        self._chunk_size = cfg["chunk_size"]      # kept for API parity (see note)
        self._white_background = cfg.get("white_background", False)
        self.alpha = cfg["alpha"]
        self.beta = cfg["beta"]
        self.cfg = cfg

    def forward(self, sampler, implicit_fn, ray_bundle, light_dir=None):
        # The reference chunk loop only limits peak memory; rays are independent
        # and there is no RNG in this forward, so a single full-batch jitted
        # pass is numerically identical and removes per-chunk dispatch overhead.
        alpha, beta = self.alpha, self.beta

        def _run(origins, directions):
            rb = RayBundle(origins, directions)
            cur = sampler(rb)
            B = cur.shape[0]
            n_pts = cur.sample_shape[1]

            distance, color = implicit_fn.get_distance_color(cur.sample_points)
            color_pts = color.reshape(B, n_pts, -1)                    # (B, P, C)

            depth_values = cur.sample_lengths[..., 0]                  # (B, P)
            deltas = jnp.concatenate(
                [depth_values[..., 1:] - depth_values[..., :-1],
                 1e10 * jnp.ones_like(depth_values[..., :1])], axis=-1)

            agg_color = sdf_volume_render_pallas(
                deltas, distance.reshape(B, n_pts), color_pts, alpha, beta)

            # reference: geometry_color = zeros_like(color) BEFORE aggregation
            geometry = jnp.zeros_like(color_pts)
            return {"color": agg_color, "geometry": geometry}

        return jax.jit(_run)(ray_bundle.origins, ray_bundle.directions)


# ----------------------------------------------------------------------------
def _reference_color(cur, implicit_fn, alpha, beta, eps=1e-10):
    """Pure-JAX reference of the PyTorch forward (for validation)."""
    B = cur.shape[0]
    dist, col = implicit_fn.get_distance_color(cur.sample_points)
    density = jnp.where(dist > 0.0,
                        0.5 * jnp.exp(-dist / beta),
                        1.0 - 0.5 * jnp.exp(dist / beta)) * alpha      # (B,P,1)
    depth = cur.sample_lengths[..., 0]
    deltas = jnp.concatenate(
        [depth[..., 1:] - depth[..., :-1], 1e10 * jnp.ones_like(depth[..., :1])],
        axis=-1)
    prods = -density[..., 0] * deltas
    exp_prods = jnp.exp(prods)
    T = jnp.cumprod(
        jnp.concatenate([jnp.ones((B, 1), jnp.float32), exp_prods], axis=1)[:, :-1],
        axis=1)
    w = T * (1.0 - exp_prods) + eps
    return jnp.sum(w[..., None] * col, axis=1)


if __name__ == "__main__":
    B = 32
    n_pts = 16
    feature_dim = 3
    alpha, beta = 10.0, 0.05

    key = jax.random.PRNGKey(0)
    k_o, k_d, k_c = jax.random.split(key, 3)
    origins = jax.random.normal(k_o, (B, 3), jnp.float32) * 0.1
    directions = jax.random.normal(k_d, (B, 3), jnp.float32)
    directions = directions / jnp.linalg.norm(directions, axis=1, keepdims=True)
    ray_bundle = RayBundle(origins, directions)

    sampler = make_stratified_sampler(n_pts, near=0.5, far=2.5)
    implicit_fn = SphereSDF(k_c, feature_dim, radius=1.0)

    renderer = VolumeSDFRenderer(
        {"chunk_size": 16, "alpha": alpha, "beta": beta})
    out = renderer.forward(sampler, implicit_fn, ray_bundle)
    jax.block_until_ready(out)

    assert out["color"].shape == (B, feature_dim)
    assert out["geometry"].shape == (B, n_pts, feature_dim)
    assert bool(jnp.all(jnp.isfinite(out["color"])))
    assert bool(jnp.all(out["geometry"] == 0.0))

    # Validate against a pure-JAX reference of the PyTorch math.
    ref = _reference_color(sampler(ray_bundle), implicit_fn, alpha, beta)
    assert bool(jnp.allclose(out["color"], ref, atol=1e-4, rtol=1e-4)), (
        "kernel/reference mismatch")

    # TODO(synk): sample_pdf (searchsorted/gather importance sampling) belongs to
    # the parent VolumeRenderer only; it is not on VolumeSDFRenderer.forward's
    # path and has no clean Pallas TPU equivalent at these shapes.
    print("KERNEL_OK")
</pallas_src>

<mosaic_0001>
module attributes {stable_mosaic.version = 11 : i64} {
  func.func @_sdf_volrender_kernel(%arg0: i32, %arg1: memref<16x128xf32, #tpu.memory_space<vmem>>, %arg2: memref<16x128xf32, #tpu.memory_space<vmem>>, %arg3: memref<3x16x128xf32, #tpu.memory_space<vmem>>, %arg4: memref<16x16xf32, #tpu.memory_space<vmem>>, %arg5: memref<16x16xf32, #tpu.memory_space<vmem>>, %arg6: memref<3x128xf32, #tpu.memory_space<vmem>>) attributes {dimension_semantics = [#tpu.dimension_semantics<parallel>], iteration_bounds = array<i64: 1>, scalar_prefetch = 0 : i64, scratch_operands = 0 : i64, tpu.core_type = #tpu.core_type<tc>, window_params = [{transform_indices = @transform_0, window_bounds = array<i64: 16, 128>}, {transform_indices = @transform_1, window_bounds = array<i64: 16, 128>}, {transform_indices = @transform_2, window_bounds = array<i64: 3, 16, 128>}, {pipeline_mode = #tpu.pipeline_mode<synchronous>, transform_indices = @transform_3, window_bounds = array<i64: 16, 16>}, {pipeline_mode = #tpu.pipeline_mode<synchronous>, transform_indices = @transform_4, window_bounds = array<i64: 16, 16>}, {transform_indices = @transform_5, window_bounds = array<i64: 3, 128>}]} {
    %c0 = arith.constant 0 : index
    %c0_0 = arith.constant 0 : index
    %0 = vector.load %arg1[%c0, %c0_0] : memref<16x128xf32, #tpu.memory_space<vmem>>, vector<16x128xf32>
    %c0_1 = arith.constant 0 : index
    %c0_2 = arith.constant 0 : index
    %1 = vector.load %arg2[%c0_1, %c0_2] : memref<16x128xf32, #tpu.memory_space<vmem>>, vector<16x128xf32>
    %2 = math.absf %1 : vector<16x128xf32>
    %cst = arith.constant 0.000000e+00 : f32
    %3 = vector.broadcast %cst : f32 to vector<16x128xf32>
    %4 = arith.subf %3, %2 : vector<16x128xf32>
    %cst_3 = arith.constant 2.000000e+01 : f32
    %5 = vector.broadcast %cst_3 : f32 to vector<16x128xf32>
    %6 = arith.mulf %4, %5 : vector<16x128xf32>
    %7 = math.exp %6 : vector<16x128xf32>
    %cst_4 = arith.constant 0.000000e+00 : f32
    %8 = vector.broadcast %cst_4 : f32 to vector<16x128xf32>
    %9 = arith.cmpf ogt, %1, %8 : vector<16x128xf32>
    %cst_5 = arith.constant 5.000000e-01 : f32
    %10 = vector.broadcast %cst_5 : f32 to vector<16x128xf32>
    %11 = arith.mulf %10, %7 : vector<16x128xf32>
    %cst_6 = arith.constant 5.000000e-01 : f32
    %12 = vector.broadcast %cst_6 : f32 to vector<16x128xf32>
    %13 = arith.mulf %12, %7 : vector<16x128xf32>
    %cst_7 = arith.constant 1.000000e+00 : f32
    %14 = vector.broadcast %cst_7 : f32 to vector<16x128xf32>
    %15 = arith.subf %14, %13 : vector<16x128xf32>
    %16 = arith.select %9, %11, %15 : vector<16x128xi1>, vector<16x128xf32>
    %cst_8 = arith.constant 1.000000e+01 : f32
    %17 = vector.broadcast %cst_8 : f32 to vector<16x128xf32>
    %18 = arith.mulf %16, %17 : vector<16x128xf32>
    %cst_9 = arith.constant 0.000000e+00 : f32
    %19 = vector.broadcast %cst_9 : f32 to vector<16x128xf32>
    %20 = arith.subf %19, %18 : vector<16x128xf32>
    %21 = arith.mulf %20, %0 : vector<16x128xf32>
    %c0_10 = arith.constant 0 : index
    %c0_11 = arith.constant 0 : index
    %22 = vector.load %arg4[%c0_10, %c0_11] : memref<16x16xf32, #tpu.memory_space<vmem>>, vector<16x16xf32>
    %cst_12 = arith.constant dense<0.000000e+00> : vector<16x128xf32>
    %23 = tpu.matmul %22, %21, %cst_12 {dimension_numbers = #tpu.dot_dimension_numbers<[1], [0], [0], [1], [0, 0, 1, 1], [], []>} : vector<16x16xf32>, vector<16x128xf32>, vector<16x128xf32> -> vector<16x128xf32>
    %24 = math.exp %23 : vector<16x128xf32>
    %c0_13 = arith.constant 0 : index
    %c0_14 = arith.constant 0 : index
    %25 = vector.load %arg5[%c0_13, %c0_14] : memref<16x16xf32, #tpu.memory_space<vmem>>, vector<16x16xf32>
    %cst_15 = arith.constant dense<0.000000e+00> : vector<16x128xf32>
    %26 = tpu.matmul %25, %24, %cst_15 {dimension_numbers = #tpu.dot_dimension_numbers<[1], [0], [0], [1], [0, 0, 1, 1], [], []>} : vector<16x16xf32>, vector<16x128xf32>, vector<16x128xf32> -> vector<16x128xf32>
    %27 = tpu.iota {dimensions = array<i32: 0>} : vector<16x128xi32>
    %c0_i32 = arith.constant 0 : i32
    %28 = vector.broadcast %c0_i32 : i32 to vector<16x128xi32>
    %29 = arith.cmpi eq, %27, %28 : vector<16x128xi32>
    %cst_16 = arith.constant 1.000000e+00 : f32
    %30 = vector.broadcast %cst_16 : f32 to vector<16x128xf32>
    %31 = arith.select %29, %30, %26 : vector<16x128xi1>, vector<16x128xf32>
    %32 = arith.subf %31, %24 : vector<16x128xf32>
    %cst_17 = arith.constant 1.000000e-10 : f32
    %33 = vector.broadcast %cst_17 : f32 to vector<16x128xf32>
    %34 = arith.addf %32, %33 : vector<16x128xf32>
    %c0_18 = arith.constant 0 : index
    %c0_19 = arith.constant 0 : index
    %c0_20 = arith.constant 0 : index
    %35 = vector.load %arg3[%c0_18, %c0_19, %c0_20] : memref<3x16x128xf32, #tpu.memory_space<vmem>>, vector<3x16x128xf32>
    %36 = vector.shape_cast %34 : vector<16x128xf32> to vector<1x16x128xf32>
    %37 = vector.broadcast %36 : vector<1x16x128xf32> to vector<3x16x128xf32>
    %38 = arith.mulf %35, %37 : vector<3x16x128xf32>
    %cst_21 = arith.constant dense<0.000000e+00> : vector<3x128xf32>
    %39 = vector.multi_reduction <add>, %38, %cst_21 [1] : vector<3x16x128xf32> to vector<3x128xf32>
    %c0_22 = arith.constant 0 : index
    %c0_23 = arith.constant 0 : index
    %40 = vector.load %arg6[%c0_22, %c0_23] : memref<3x128xf32, #tpu.memory_space<vmem>>, vector<3x128xf32>
    tpu.vector_store %arg6[%c0_22, %c0_23], %39 {strides = array<i32>} : memref<3x128xf32, #tpu.memory_space<vmem>>, vector<3x128xf32>,
    return
  }
  func.func @transform_0(%arg0: i32) -> (i32, i32) {
    %c0_i32 = arith.constant 0 : i32
    %c0_i32_0 = arith.constant 0 : i32
    return %c0_i32, %arg0 : i32, i32
  }
  func.func @transform_1(%arg0: i32) -> (i32, i32) {
    %c0_i32 = arith.constant 0 : i32
    %c0_i32_0 = arith.constant 0 : i32
    return %c0_i32, %arg0 : i32, i32
  }
  func.func @transform_2(%arg0: i32) -> (i32, i32, i32) {
    %c0_i32 = arith.constant 0 : i32
    %c0_i32_0 = arith.constant 0 : i32
    %c0_i32_1 = arith.constant 0 : i32
    return %c0_i32, %c0_i32_0, %arg0 : i32, i32, i32
  }
  func.func @transform_3(%arg0: i32) -> (i32, i32) {
    %c0_i32 = arith.constant 0 : i32
    %c0_i32_0 = arith.constant 0 : i32
    %c0_i32_1 = arith.constant 0 : i32
    return %c0_i32, %c0_i32_0 : i32, i32
  }
  func.func @transform_4(%arg0: i32) -> (i32, i32) {
    %c0_i32 = arith.constant 0 : i32
    %c0_i32_0 = arith.constant 0 : i32
    %c0_i32_1 = arith.constant 0 : i32
    return %c0_i32, %c0_i32_0 : i32, i32
  }
  func.func @transform_5(%arg0: i32) -> (i32, i32) {
    %c0_i32 = arith.constant 0 : i32
    %c0_i32_0 = arith.constant 0 : i32
    return %c0_i32, %arg0 : i32, i32
  }
}

</mosaic_0001>

<bundles_post_ra>
// kernel: _run.1
= control target key start
LH: loop header
LB: loop body
LE: loop exit
PB: predicated region body
PF: predicated region fallthrough
CT: control target
= control target key end

     0   :  { %vm50_vm0 = vcmask 130048   ;;  %v219_v38 = vlaneseq  ;;  %vm266_vm4 = vcmask 1041409   ;;  %vm268_vm5 = vcmask 1042434   ;;  %s397_s1 = inlined_call_operand.vmem [shape: f32[16,128], index: 1, kind: input, shape index: {}]   ;;  %s398_s3 = inlined_call_operand.vmem [shape: f32[16,16], index: 3, kind: input, shape index: {}]   ;;  %s399_s0 = inlined_call_operand.vmem [shape: f32[16,128], index: 0, kind: input, shape index: {}]   ;;  %s400_s4 = inlined_call_operand.vmem [shape: f32[16,16], index: 4, kind: input, shape index: {}]   ;;  %s401_s2 = inlined_call_operand.vmem [shape: f32[3,16,128], index: 2, kind: input, shape index: {}]   ;;  %s402_s5 = inlined_call_operand.vmem [shape: f32[3,128], index: 5, kind: output, shape index: {}]  }
   0x1   :  { %v22_v0 = vld [vmem:[%s397_s1] sm:$0xff]  ;;  %v23_v1 = vld [vmem:[%s397_s1 + $0x8] sm:$0xff]  ;;  %v233_v46 = vld [vmem:[%s401_s2 + $0x18] sm:$0xff] }
   0x2   :  { %v24_v2 = vand.u32 2147483647, %v22_v0  ;;  %v48_v3 = vld [vmem:[%s398_s3] sm:$0xff]  ;;  %v25_v4 = vand.u32 2147483647, %v23_v1  ;;  %vm34_vm1 = vcmp.gt.f32.partialorder %v22_v0, 0.0 }
   0x3   :  { %292 = vmatprep.mubr.msk.f32.mxu0 %vm50_vm0, %v48_v3  ;;  %vm35_vm2 = vcmp.gt.f32.partialorder %v23_v1, 0.0  ;;  %v20_v20 = vld [vmem:[%s399_s0] sm:$0xff]  ;;  %v21_v22 = vld [vmem:[%s399_s0 + $0x8] sm:$0xff]  ;;  %v220_v39 = vshrl.u32 %v219_v38, 7  ;;  %v232_v50 = vld [vmem:[%s401_s2 + $0x10] sm:$0xff] }
   0x4   :  { %v26_v5 = vsub.f32 0.0, %v24_v2  ;;  %v27_v6 = vsub.f32 0.0, %v25_v4  ;;  %v49_v28 = vld [vmem:[%s398_s3 + $0x8] sm:$0xff]  ;;  %v136_v29 = vld [vmem:[%s400_s4] sm:$0xff] }
   0x5   :  { %299 = vmatprep.mubr.msk.f32.mxu1 %vm50_vm0, %v136_v29  ;;  %v137_v37 = vld [vmem:[%s400_s4 + $0x8] sm:$0xff]  ;;  %vm222_vm3 = vcmp.eq.s32.totalorder %v220_v39, 0  ;;  %v230_v49 = vld [vmem:[%s401_s2] sm:$0xff] }
   0x6   :  { %v28_v7 = vmul.f32 20.0, %v26_v5  ;;  %v29_v8 = vmul.f32 20.0, %v27_v6  ;;  %v231_v45 = vld [vmem:[%s401_s2 + $0x8] sm:$0xff]  ;;  %v234_v51 = vld [vmem:[%s401_s2 + $0x20] sm:$0xff] }
   0x7   :  { %v235_v47 = vld [vmem:[%s401_s2 + $0x28] sm:$0xff] }
   0x8   :  { %v30_v9 = vmul.f32 1.442695, %v28_v7  ;;  %v32_v10 = vmul.f32 1.442695, %v29_v8 }
   0xa   :  { %310 = vpow2.f32 %v30_v9 }
   0xb   :  { %312 = vpow2.f32 %v32_v10 }
  0x14   :  { %v311_v11 = vpop.eup %310 }
  0x15   :  { %v313_v12 = vpop.eup %312  ;;  %v36_v13 = vmul.f32 0.5, %v311_v11 }
  0x16   :  { %v37_v14 = vmul.f32 0.5, %v313_v12 }
  0x17   :  { %v38_v15 = vsub.f32 1.0, %v36_v13 }
  0x18   :  { %v39_v16 = vsub.f32 1.0, %v37_v14 }
  0x19   :  { %v40_v17 = vsel %vm34_vm1, %v36_v13, %v38_v15 }
  0x1a   :  { %v41_v18 = vsel %vm35_vm2, %v37_v14, %v39_v16  ;;  %v42_v19 = vmul.f32 10.0, %v40_v17 }
  0x1b   :  { %v43_v21 = vmul.f32 10.0, %v41_v18 }
  0x1c   :  { %v44_v23 = vsub.f32 0.0, %v42_v19 }
  0x1d   :  { %v45_v24 = vsub.f32 0.0, %v43_v21 }
  0x1e   :  { %v46_v25 = vmul.f32 %v44_v23, %v20_v20 }
  0x1f   :  { %v47_v26 = vmul.f32 %v45_v24, %v21_v22 }
  0x21   :  { %v302_v27 = vpack.c.bf16 %v47_v26, %v46_v25 }
  0x23   :  { %303 = vmatprep.subr.bf16.mxu0 %v302_v27 }
  0x24   :  { %305 = vmatpush3.bf16.msra.mxu0 %v302_v27 }
  0x27   :  { %293 = vmatmul.mubr.msk.f32.vlgmr.msra.gmra.mrb[0].mxu0 %vm50_vm0, %v49_v28 }
  0xfa   :  { %v294_v30 = vpop.f32.mrb[0].mxu0 }
  0xfb   :  { %v134_v31 = vmul.f32 1.442695, %v294_v30  ;;  %v123_v32 = vpop.f32.mrb[1].mxu0 }
  0xfc   :  { %v132_v33 = vmul.f32 1.442695, %v123_v32 }
  0xfd   :  { %314 = vpow2.f32 %v134_v31 }
  0xfe   :  { %316 = vpow2.f32 %v132_v33 }
 0x107   :  { %v315_v34 = vpop.eup %314 }
 0x108   :  { %v317_v35 = vpop.eup %316 }
 0x109   :  { %v306_v36 = vpack.c.bf16 %v315_v34, %v317_v35 }
 0x10b   :  { %307 = vmatprep.subr.bf16.mxu1 %v306_v36 }
 0x10c   :  { %309 = vmatpush3.bf16.msra.mxu1 %v306_v36 }
 0x10f   :  { %300 = vmatmul.mubr.msk.f32.vlgmr.msra.gmra.mrb[0].mxu1 %vm50_vm0, %v137_v37 }
 0x1e2   :  { %v301_v40 = vpop.f32.mrb[0].mxu1 }
 0x1e3   :  { %v227_v41 = vsub.f32 %v301_v40, %v315_v34  ;;  %v210_v42 = vpop.f32.mrb[1].mxu1 }
 0x1e4   :  { %v224_v43 = vsel %vm222_vm3, 1.0, %v210_v42 }
 0x1e5   :  { %v229_v44 = vadd.f32 1e-10, %v227_v41  ;;  %v226_v48 = vsub.f32 %v224_v43, %v317_v35 }
 0x1e7   :  { %v228_v52 = vadd.f32 1e-10, %v226_v48  ;;  %v237_v53 = vmul.f32 %v231_v45, %v229_v44  ;;  %v239_v54 = vmul.f32 %v233_v46, %v229_v44  ;;  %v241_v55 = vmul.f32 %v235_v47, %v229_v44 }
 0x1e9   :  { %v236_v56 = vmul.f32 %v230_v49, %v228_v52  ;;  %v238_v57 = vmul.f32 %v232_v50, %v228_v52  ;;  %v240_v58 = vmul.f32 %v234_v51, %v228_v52 }
 0x1eb   :  { %v242_v59 = vadd.f32 %v237_v53, %v236_v56  ;;  %v249_v60 = vadd.f32 %v239_v54, %v238_v57  ;;  %v256_v61 = vadd.f32 %v241_v55, %v240_v58 }
 0x1ed   :  { %v243_v62 = vrot.slane %v242_v59, 4  ;;  %v250_v63 = vrot.slane %v249_v60, 4  ;;  %v257_v0 = vrot.slane %v256_v61, 4 }
 0x1ef   :  { %v244_v1 = vadd.f32 %v243_v62, %v242_v59  ;;  %v251_v2 = vadd.f32 %v250_v63, %v249_v60  ;;  %v258_v3 = vadd.f32 %v257_v0, %v256_v61 }
 0x1f1   :  { %v245_v4 = vrot.slane %v244_v1, 2  ;;  %v252_v5 = vrot.slane %v251_v2, 2  ;;  %v259_v6 = vrot.slane %v258_v3, 2 }
 0x1f3   :  { %v246_v7 = vadd.f32 %v245_v4, %v244_v1  ;;  %v253_v8 = vadd.f32 %v252_v5, %v251_v2  ;;  %v260_v9 = vadd.f32 %v259_v6, %v258_v3 }
 0x1f5   :  { %v247_v10 = vrot.slane %v246_v7, 1  ;;  %v254_v11 = vrot.slane %v253_v8, 1  ;;  %v261_v12 = vrot.slane %v260_v9, 1 }
 0x1f7   :  { %v248_v13 = vadd.f32 %v247_v10, %v246_v7  ;;  %v255_v14 = vadd.f32 %v254_v11, %v253_v8  ;;  %v262_v15 = vadd.f32 %v261_v12, %v260_v9 }
 0x1f9   :  { %v267_v16 = vsel %vm266_vm4, %v255_v14, %v248_v13 }
 0x1fa   :  { %v269_v17 = vsel %vm268_vm5, %v262_v15, %v267_v16 }
 0x1fb   :  { %271 = vst [vmem:[%s402_s5] sm:$0x7] %v269_v17 }

</bundles_post_ra>
